<compile_context>
chip_gen: v7x
topology: tpu7x:2x2x1
jax: 0.10.0
libtpu: 0.0.40
codegen_flags: <defaults>
</compile_context>

<pallas_src>
import jax
import jax.numpy as jnp
from jax.experimental import pallas as pl
from jax.experimental.pallas import tpu as pltpu


def _sse_kernel(w_ref, b_ref, a_ref, x_ref, o_ref):
    # w_ref: (C, C) f32 1x1-conv weight
    # b_ref: (C, 1) f32 bias         (lane-broadcast)
    # a_ref: (C, 1) f32 PReLU slope  (lane-broadcast)
    # x_ref: (1, C, TP) input tile;  o_ref: (1, C, TP) output tile
    x = x_ref[0]                                    # (C, TP)
    c = x.shape[0]
    if c <= 8:
        # Tiny channel count: a (C,C)x(C,TP) matmul uses <4% of the MXU and
        # pays its push/pop latency; do the mix as C broadcast FMAs on the VPU.
        xf = x.astype(jnp.float32)
        y = jnp.zeros(x.shape, jnp.float32) + b_ref[...]
        for k in range(c):                          # static, fully unrolled
            y = y + w_ref[:, k:k + 1] * xf[k:k + 1, :]
    else:
        y = jnp.dot(w_ref[...], x, preferred_element_type=jnp.float32)
        y = y + b_ref[...]
    y = jnp.where(y > 0, y, a_ref[...] * y)         # PReLU
    o_ref[0] = y.astype(o_ref.dtype)


def _round_up(v, m):
    return -(-v // m) * m


def _sublane(itemsize):
    # Second-minor VMEM tiling: 8 rows for 4-byte, 16 for 2-byte, 32 for 1-byte.
    return {4: 8, 2: 16, 1: 32}.get(itemsize, 8)


def _default_block_bytes():
    # 4 MiB blocks are safe on v7x (64 MiB VMEM; deep grids win there); on
    # v5e / v6e (128 MiB VMEM) grow to 8 MiB to amortize per-step overhead.
    try:
        if pltpu.get_tpu_info().vmem_capacity_bytes >= (100 << 20):
            return 8 << 20
    except Exception:
        pass
    return 4 << 20


def _pick_lane_tile(P, C, itemsize, batch, max_block_bytes):
    """Lane tile: multiple of 128, (C_pad, tp) block <= max_block_bytes, and a
    grid deep enough to overlap DMA and feed both v7x TensorCores."""
    if P < 128:
        return P                        # one tiny ragged block (== full dim)
    c_pad = _round_up(C, _sublane(itemsize))         # real sublane footprint
    cap = max(128, (max_block_bytes // (c_pad * itemsize)) // 128 * 128)
    tp = min(cap, (P // 128) * 128)
    # Shrink until there are >= 8 blocks total (when possible): keeps both v7x
    # TCs busy and gives the double-buffer pipeline work to overlap.
    while tp > 128 and batch * (-(-P // tp)) < 8:
        tp = max(128, _round_up(tp // 2, 128))
    return tp


def _vmem_limit_bytes(C, tp, itemsize):
    c_pad_x = _round_up(C, _sublane(itemsize))
    blk = c_pad_x * max(tp, 128) * itemsize          # one (C, tp) activation block
    c_pad_w = _round_up(C, 8)                        # params stay f32
    w = c_pad_w * max(_round_up(C, 128), 128) * 4
    vec = c_pad_w * 128 * 4                          # bias / alpha, lane-padded
    # in + out double-buffered; budget parameter blocks as double-buffered too
    # (runtime fetches them once but reserves the buffers).
    need = 2 * (blk + blk) + 2 * (w + 2 * vec)
    need = int(need * 1.25) + (1 << 20)              # compiler-scratch margin
    return int(min(max(need, 16 << 20), 64 << 20))   # 64 MiB = v7x physical


def sse_forward(x, weight, bias, alpha, *, max_block_bytes=None):
    """Pallas sSE forward: x (B, C, H, W) -> (B, C, H, W)."""
    B, C, H, W = x.shape
    P = H * W
    itemsize = jnp.dtype(x.dtype).itemsize

    # Keep parameters in f32 (matches the f32 PyTorch module; negligible BW).
    w2 = weight.reshape(C, C).astype(jnp.float32)            # (C_out,C_in,1,1)->(C,C)
    b2 = bias.reshape(C, 1).astype(jnp.float32)
    # nn.PReLU() default is a single shared slope; per-channel also supported.
    a2 = jnp.broadcast_to(jnp.asarray(alpha, jnp.float32).reshape(-1, 1), (C, 1))

    if max_block_bytes is None:
        max_block_bytes = _default_block_bytes()
    tp = _pick_lane_tile(P, C, itemsize, B, max_block_bytes)
    n_sp = pl.cdiv(P, tp)            # ragged P -> last block masked, never oversized

    xr = x.reshape(B, C, P)          # free view; lane-dense trailing dim

    cost = pl.CostEstimate(
        flops=2 * B * C * C * P + 3 * B * C * P,
        bytes_accessed=2 * B * C * P * itemsize + (C * C + 2 * C) * 4,
        transcendentals=0,
    )

    out = pl.pallas_call(
        _sse_kernel,
        out_shape=jax.ShapeDtypeStruct((B, C, P), x.dtype),
        grid=(B, n_sp),
        in_specs=[
            # Invariant parameter blocks (constant index_map -> fetched once).
            pl.BlockSpec((C, C), lambda b, p: (0, 0)),
            pl.BlockSpec((C, 1), lambda b, p: (0, 0)),
            pl.BlockSpec((C, 1), lambda b, p: (0, 0)),
            pl.BlockSpec((1, C, tp), lambda b, p: (b, 0, p)),
        ],
        out_specs=pl.BlockSpec((1, C, tp), lambda b, p: (b, 0, p)),
        compiler_params=pltpu.CompilerParams(
            dimension_semantics=("parallel", "parallel"),
            vmem_limit_bytes=_vmem_limit_bytes(C, tp, itemsize),
        ),
        cost_estimate=cost,
    )(w2, b2, a2, xr)

    return out.reshape(B, C, H, W)


def sse_ref(x, weight, bias, alpha):
    """Pure-JAX reference mirroring the PyTorch sSE.forward."""
    C = x.shape[1]
    w2 = weight.reshape(C, C)
    y = jnp.einsum('oc,bchw->bohw', w2, x) + bias.reshape(1, C, 1, 1)
    a = jnp.asarray(alpha)
    a = a.reshape(1, C, 1, 1) if a.size == C else a.reshape(1, 1, 1, 1)
    return jnp.where(y > 0, y, a * y)


if __name__ == "__main__":
    key = jax.random.PRNGKey(0)
    B, C, H, W = 2, 4, 16, 16                        # H*W = 256 -> lane-dense
    kx, kw, kb = jax.random.split(key, 3)

    x = jax.random.normal(kx, (B, C, H, W), dtype=jnp.float32)
    # Conv2d(C, C, kernel_size=1) parameters, PyTorch layout (C_out, C_in, 1, 1)
    weight = jax.random.normal(kw, (C, C, 1, 1), dtype=jnp.float32) * 0.1
    bias = jax.random.normal(kb, (C,), dtype=jnp.float32) * 0.1
    alpha = jnp.full((1,), 0.25, dtype=jnp.float32)  # nn.PReLU() default init

    y = jax.block_until_ready(sse_forward(x, weight, bias, alpha))
    y_ref = sse_ref(x, weight, bias, alpha)

    assert y.shape == (B, C, H, W), y.shape
    assert jnp.allclose(y, y_ref, atol=1e-5, rtol=1e-5), "mismatch vs reference"

    print("KERNEL_OK")
</pallas_src>

<mosaic_0001>
module attributes {stable_mosaic.version = 11 : i64} {
  func.func @_sse_kernel(%arg0: i32, %arg1: i32, %arg2: memref<4x4xf32, #tpu.memory_space<vmem>>, %arg3: memref<4x1xf32, #tpu.memory_space<vmem>>, %arg4: memref<4x1xf32, #tpu.memory_space<vmem>>, %arg5: memref<1x4x128xf32, #tpu.memory_space<vmem>>, %arg6: memref<1x4x128xf32, #tpu.memory_space<vmem>>) attributes {dimension_semantics = [#tpu.dimension_semantics<parallel>, #tpu.dimension_semantics<parallel>], iteration_bounds = array<i64: 2, 2>, scalar_prefetch = 0 : i64, scratch_operands = 0 : i64, tpu.core_type = #tpu.core_type<tc>, window_params = [{pipeline_mode = #tpu.pipeline_mode<synchronous>, transform_indices = @transform_0, window_bounds = array<i64: 4, 4>}, {pipeline_mode = #tpu.pipeline_mode<synchronous>, transform_indices = @transform_1, window_bounds = array<i64: 4, 1>}, {pipeline_mode = #tpu.pipeline_mode<synchronous>, transform_indices = @transform_2, window_bounds = array<i64: 4, 1>}, {transform_indices = @transform_3, window_bounds = array<i64: 1, 4, 128>}, {transform_indices = @transform_4, window_bounds = array<i64: 1, 4, 128>}]} {
    %c0 = arith.constant 0 : index
    %c0_0 = arith.constant 0 : index
    %c0_1 = arith.constant 0 : index
    %0 = vector.load %arg5[%c0, %c0_0, %c0_1] : memref<1x4x128xf32, #tpu.memory_space<vmem>>, vector<1x4x128xf32>
    %1 = vector.shape_cast %0 : vector<1x4x128xf32> to vector<4x128xf32>
    %cst = arith.constant 0.000000e+00 : f32
    %2 = vector.broadcast %cst : f32 to vector<4x128xf32>
    %c0_2 = arith.constant 0 : index
    %c0_3 = arith.constant 0 : index
    %3 = vector.load %arg3[%c0_2, %c0_3] : memref<4x1xf32, #tpu.memory_space<vmem>>, vector<4x1xf32>
    %4 = vector.broadcast %3 : vector<4x1xf32> to vector<4x128xf32>
    %5 = arith.addf %2, %4 : vector<4x128xf32>
    %c0_4 = arith.constant 0 : index
    %c0_5 = arith.constant 0 : index
    %6 = vector.load %arg2[%c0_4, %c0_5] : memref<4x4xf32, #tpu.memory_space<vmem>>, vector<4x1xf32>
    %7 = vector.extract_strided_slice %1 {offsets = [0, 0], sizes = [1, 128], strides = [1, 1]} : vector<4x128xf32> to vector<1x128xf32>
    %8 = vector.broadcast %6 : vector<4x1xf32> to vector<4x128xf32>
    %9 = vector.broadcast %7 : vector<1x128xf32> to vector<4x128xf32>
    %10 = arith.mulf %8, %9 : vector<4x128xf32>
    %11 = arith.addf %5, %10 : vector<4x128xf32>
    %c0_6 = arith.constant 0 : index
    %c1 = arith.constant 1 : index
    %12 = vector.load %arg2[%c0_6, %c1] : memref<4x4xf32, #tpu.memory_space<vmem>>, vector<4x1xf32>
    %13 = vector.extract_strided_slice %1 {offsets = [1, 0], sizes = [1, 128], strides = [1, 1]} : vector<4x128xf32> to vector<1x128xf32>
    %14 = vector.broadcast %12 : vector<4x1xf32> to vector<4x128xf32>
    %15 = vector.broadcast %13 : vector<1x128xf32> to vector<4x128xf32>
    %16 = arith.mulf %14, %15 : vector<4x128xf32>
    %17 = arith.addf %11, %16 : vector<4x128xf32>
    %c0_7 = arith.constant 0 : index
    %c2 = arith.constant 2 : index
    %18 = vector.load %arg2[%c0_7, %c2] : memref<4x4xf32, #tpu.memory_space<vmem>>, vector<4x1xf32>
    %19 = vector.extract_strided_slice %1 {offsets = [2, 0], sizes = [1, 128], strides = [1, 1]} : vector<4x128xf32> to vector<1x128xf32>
    %20 = vector.broadcast %18 : vector<4x1xf32> to vector<4x128xf32>
    %21 = vector.broadcast %19 : vector<1x128xf32> to vector<4x128xf32>
    %22 = arith.mulf %20, %21 : vector<4x128xf32>
    %23 = arith.addf %17, %22 : vector<4x128xf32>
    %c0_8 = arith.constant 0 : index
    %c3 = arith.constant 3 : index
    %24 = vector.load %arg2[%c0_8, %c3] : memref<4x4xf32, #tpu.memory_space<vmem>>, vector<4x1xf32>
    %25 = vector.extract_strided_slice %1 {offsets = [3, 0], sizes = [1, 128], strides = [1, 1]} : vector<4x128xf32> to vector<1x128xf32>
    %26 = vector.broadcast %24 : vector<4x1xf32> to vector<4x128xf32>
    %27 = vector.broadcast %25 : vector<1x128xf32> to vector<4x128xf32>
    %28 = arith.mulf %26, %27 : vector<4x128xf32>
    %29 = arith.addf %23, %28 : vector<4x128xf32>
    %cst_9 = arith.constant 0.000000e+00 : f32
    %30 = vector.broadcast %cst_9 : f32 to vector<4x128xf32>
    %31 = arith.cmpf ogt, %29, %30 : vector<4x128xf32>
    %c0_10 = arith.constant 0 : index
    %c0_11 = arith.constant 0 : index
    %32 = vector.load %arg4[%c0_10, %c0_11] : memref<4x1xf32, #tpu.memory_space<vmem>>, vector<4x1xf32>
    %33 = vector.broadcast %32 : vector<4x1xf32> to vector<4x128xf32>
    %34 = arith.mulf %33, %29 : vector<4x128xf32>
    %35 = arith.select %31, %29, %34 : vector<4x128xi1>, vector<4x128xf32>
    %c0_12 = arith.constant 0 : index
    %c0_13 = arith.constant 0 : index
    %c0_14 = arith.constant 0 : index
    %36 = vector.load %arg6[%c0_12, %c0_13, %c0_14] : memref<1x4x128xf32, #tpu.memory_space<vmem>>, vector<1x4x128xf32>
    %37 = vector.shape_cast %36 : vector<1x4x128xf32> to vector<4x128xf32>
    %38 = vector.shape_cast %35 : vector<4x128xf32> to vector<1x4x128xf32>
    tpu.vector_store %arg6[%c0_12, %c0_13, %c0_14], %38 {strides = array<i32>} : memref<1x4x128xf32, #tpu.memory_space<vmem>>, vector<1x4x128xf32>,
    return
  }
  func.func @transform_0(%arg0: i32, %arg1: i32) -> (i32, i32) {
    %c0_i32 = arith.constant 0 : i32
    %c0_i32_0 = arith.constant 0 : i32
    %c0_i32_1 = arith.constant 0 : i32
    return %c0_i32, %c0_i32_0 : i32, i32
  }
  func.func @transform_1(%arg0: i32, %arg1: i32) -> (i32, i32) {
    %c0_i32 = arith.constant 0 : i32
    %c0_i32_0 = arith.constant 0 : i32
    %c0_i32_1 = arith.constant 0 : i32
    return %c0_i32, %c0_i32_0 : i32, i32
  }
  func.func @transform_2(%arg0: i32, %arg1: i32) -> (i32, i32) {
    %c0_i32 = arith.constant 0 : i32
    %c0_i32_0 = arith.constant 0 : i32
    %c0_i32_1 = arith.constant 0 : i32
    return %c0_i32, %c0_i32_0 : i32, i32
  }
  func.func @transform_3(%arg0: i32, %arg1: i32) -> (i32, i32, i32) {
    %c0_i32 = arith.constant 0 : i32
    %c0_i32_0 = arith.constant 0 : i32
    return %arg0, %c0_i32, %arg1 : i32, i32, i32
  }
  func.func @transform_4(%arg0: i32, %arg1: i32) -> (i32, i32, i32) {
    %c0_i32 = arith.constant 0 : i32
    %c0_i32_0 = arith.constant 0 : i32
    return %arg0, %c0_i32, %arg1 : i32, i32, i32
  }
}

</mosaic_0001>

<bundles_post_ra>
// kernel: tpu_custom_call.1
= control target key start
LH: loop header
LB: loop body
LE: loop exit
PB: predicated region body
PF: predicated region fallthrough
CT: control target
= control target key end

     0   :  { %9 = vsyncpa [#allocation3], 0  ;;  %s741_s0 = inlined_call_operand.vmem [shape: f32[4,4], index: 0, kind: input, shape index: {}]   ;;  %s742_s1 = inlined_call_operand.vmem [shape: f32[4,1], index: 1, kind: input, shape index: {}]   ;;  %s743_s2 = inlined_call_operand.vmem [shape: f32[4,1], index: 2, kind: input, shape index: {}]   ;;  %s744_s3 = inlined_call_operand.vmem [shape: f32[2,4,256], index: 3, kind: input, shape index: {}]   ;;  %s745_s4 = inlined_call_operand.hbm [shape: f32[2,4,256], index: 4, kind: output, shape index: {}]  }
   0x1   :  { %11 = vsyncpa [#allocation3 + $0x1], 0  ;;  %s595_s15 = smov 0   ;;  %s597_s16 = smov 0  }
   0x2   :  { %s599_s17 = smov 0   ;;  %s601_s18 = smov 0  }
   0x3   :  { %s603_s19 = smov 0   ;;  %s605_s20 = smov 0  }
   0x4   :  { %s607_s21 = smov 0   ;;  %s609_s22 = smov 0  }
   0x5 LB: > { %s375_s23 = sadd.s32 4294967295, %s563_s22   ;;  %s376_s24 = sadd.s32 4294967294, %s563_s22   ;;  %s563_s22 = sphi %s609_s22, %s17_s22   ;;  %s559_s21 = sphi %s607_s21, %s754_s21   ;;  %s555_s20 = sphi %s605_s20, %s753_s20   ;;  %s551_s19 = sphi %s603_s19, %s752_s19   ;;  %s547_s18 = sphi %s601_s18, %s751_s18   ;;  %s543_s17 = sphi %s599_s17, %s750_s17   ;;  %s539_s16 = sphi %s597_s16, %s749_s16   ;;  %s535_s15 = sphi %s595_s15, %s748_s15  }
   0x6   : > { %s26_s25 = sadd.s32 1, %s555_s20  ;;  %s29_s26 = sadd.s32 1, %s559_s21 }
   0x7   : > { %p27_p0 = scmp.ge.s32.totalorder %s26_s25, 2  ;;  %p139_p1 = scmp.ne.s32.totalorder %s543_s17, %s539_s16 }
   0x8   : > { %p140_p2 = scmp.eq.s32.totalorder %s375_s23, 3  ;;  %p145_p5 = scmp.ne.s32.totalorder %s539_s16, %s535_s15 }
   0x9   : > { %s756_s25 = smov (%p27_p0, %s26_s25), 0  ;;  %s758_s26 = smov (!%p27_p0, %s29_s26), %s559_s21 }
   0xa   : > { %s125_s27 = ssub.s32 %s555_s20, %s756_s25  ;;  %p646_p3 = por %p140_p2, %p139_p1 }
   0xb   : > { %p31_p4 = scmp.ge.s32.totalorder %s758_s26, 2  ;;  %p146_p6 = scmp.eq.s32.totalorder %s376_s24, 3 }
   0xc   : > { %p379_p7 = scmp.ge.s32.totalorder %s563_s22, 1  ;;  %p184_p9 = scmp.lt.s32.totalorder %s563_s22, 5 }
   0xd   : > { %s760_s26 = smov (%p31_p4, %s758_s26), 0  ;;  %p655_p8 = por %p146_p6, %p145_p5 }
   0xe   : > { %s124_s30 = ssub.s32 %s559_s21, %s760_s26  ;;  %s129_s5 = sadd.s32 1, %s543_s17 }
   0xf   : > { %s126_s6 = sor.u32 %s125_s27, %s124_s30  ;;  %p185_p10 = pnand %p379_p7, %p184_p9 }
  0x10   : > { %p127_p11 = scmp.eq.s32.totalorder %s126_s6, 0  ;;  %v229_v0 = vld [vmem:[%s741_s0] sm:$0xf] (!%p185_p10)  ;;  %v565_v1 = vmov (!%p185_p10), 0   ;;  %v566_v2 = vmov (!%p185_p10), 1   ;;  %v567_v4 = vmov (!%p185_p10), 2   ;;  %v235_v7 = vlaneseq (!%p185_p10) }
  0x11   : > { %188 = sbr.rel (%p185_p10) target bundleno = 177 (0xb1), region = 36  ;;  %463 = vset.pattern.permute.xlu0 (!%p185_p10), %v565_v1  ;;  %464 = vset.pattern.permute.xlu1 (!%p185_p10), %v566_v2  ;;  %v222_v3 = vld [vmem:[%s742_s1] sm:$0xf] (!%p185_p10)  ;;  %v568_v6 = vmov (!%p185_p10), 3   ;;  %p213_p12 = scmp.lt.s32.totalorder (!%p185_p10), %s551_s19, 1 }
  0x12   : > { %s664_s7 = scalar_select %p127_p11, %s543_s17, %s129_s5  }
  0x13   : > { %232 = vperm.xlu0 (!%p185_p10), %463, %v229_v0   ;;  %242 = vperm.xlu1 (!%p185_p10), %464, %v229_v0   ;;  %v272_v5 = vld [vmem:[%s743_s2] sm:$0xf] (!%p185_p10)  ;;  %p215_p13 = scmp.lt.s32.totalorder (!%p185_p10), %s547_s18, 1  ;;  %v236_v8 = vshrl.u32 (!%p185_p10), %v235_v7, 7  ;;  %s210_s9 = sand.u32 (!%p185_p10), 1, %s539_s16  }
  0x14   : > { %s380_s10 = sshll.u32 (!%p185_p10), %s210_s9, 2  ;;  %s384_s11 = sshll.u32 (!%p185_p10), %s551_s19, 1 }
  0x15   : > { %v237_v9 = vsub.s32 (!%p185_p10), 0, %v236_v8  ;;  %v247_v11 = vsub.s32 (!%p185_p10), 1, %v236_v8  ;;  %v257_v12 = vsub.s32 (!%p185_p10), 2, %v236_v8  ;;  %v267_v18 = vsub.s32 (!%p185_p10), 3, %v236_v8  ;;  %s293_s12 = sadd.s32 (!%p185_p10), %s547_s18, %s384_s11  ;;  %s569_s5 = smov (!%p185_p10), [#allocation2]  }
  0x16   : > { %s385_s13 = sshll.u32 (!%p185_p10), %s293_s12, 6  ;;  %s473_s6 = sshll.u32 (!%p185_p10), %s569_s5, 4  ;;  %s474_s6 = int_to_ptr.vmem [resolvable:$false] %s473_s6 }
  0x17   : > { %225 = vperm.xlu0 (!%p185_p10), %463, %v222_v3   ;;  %465 = vset.pattern.permute.xlu1 (!%p185_p10), %v567_v4 }
  0x18   : > { %252 = vperm.xlu1 %465, %v229_v0   ;;  %s214_s14 = scalar_select %p213_p12, %s551_s19, 1 }
  0x19   : > { %s216_s23 = scalar_select %p215_p13, %s547_s18, 1 }
  0x1a   : > { %s381_s24 = sshll.u32 %s214_s14, 1  ;;  %s212_s14 = scalar_lea.vmem [#allocation2], %s380_s10 }
  0x1b   : > { %466 = vset.pattern.permute.xlu0 %v568_v6  ;;  %s218_s27 = sadd.s32 %s381_s24, %s216_s23  ;;  %s297_s23 = sshll.u32 %s212_s14, 4  ;;  %s690_s23 = int_to_ptr.vmem [resolvable:$true] %s297_s23 }
  0x1c   : > { %262 = vperm.xlu0 %466, %v229_v0   ;;  %467 = vset.pattern.permute.xlu1 %v565_v1  ;;  %s382_s30 = sshll.u32 %s218_s27, 2  ;;  %s282_s18 = scalar_lea.sflag [#allocation3], %s210_s9 }
  0x1d   : > { %275 = vperm.xlu1 %467, %v272_v5   ;;  %s220_s8 = scalar_lea.vmem %s744_s3, %s382_s30  ;;  %s688_s30 = scalar_lea.hbm %s745_s4, %s385_s13 }
  0x1e   : > { %v221_v10 = vld [vmem:[%s220_s8] sm:$0xf]  ;;  %s469_s19 = scalar_lea.vmem %s690_s23, 64  ;;  %s475_s8 = scalar_lea.vmem %s474_s6, 128 }
  0x1f   : > { %v238_v13 = vrot.slane %v221_v10, %v237_v9  ;;  %v248_v16 = vrot.slane %v221_v10, %v247_v11  ;;  %v258_v17 = vrot.slane %v221_v10, %v257_v12  ;;  %v268_v25 = vrot.slane %v221_v10, %v267_v18  ;;  %p470_p0 = scmp.ne.s32.totalorder %s690_s23, %s469_s19  ;;  %p476_p4 = scmp.lt.s32.totalorder %s690_s23, %s474_s6 }
  0x20   : > { %468 = vset.pattern.permute.xlu0 %v565_v1  ;;  %p477_p5 = scmp.lt.s32.totalorder %s475_s8, %s469_s19 }
  0x21   : > { %p471_p1 = pnand %p470_p0, %p646_p3 }
  0x22   : > { %p478_p6 = por %p477_p5, %p476_p4 }
  0x23   : > { %p472_p2 = pneg %p471_p1 }
  0x25   : > { %p479_p7 = pnand %p478_p6, %p472_p2 }
  0x92   : > { %v233_v14 = vpop.permute.xlu0 %232  ;;  %v243_v15 = vpop.permute.xlu1 %242 }
  0x93   : > { %v239_v19 = vmul.f32 %v238_v13, %v233_v14  ;;  %v249_v21 = vmul.f32 %v248_v16, %v243_v15 }
  0x96   : > { %v226_v20 = vpop.permute.xlu0 %225 }
  0x97   : > { %v240_v22 = vadd.f32 %v239_v19, %v226_v20  ;;  %v253_v23 = vpop.permute.xlu1 %252 }
  0x98   : > { %v259_v24 = vmul.f32 %v258_v17, %v253_v23 }
  0x99   : > { %v250_v26 = vadd.f32 %v249_v21, %v240_v22 }
  0x9b   : > { %v260_v27 = vadd.f32 %v259_v24, %v250_v26  ;;  %v263_v28 = vpop.permute.xlu0 %262 }
  0x9c   : > { %v269_v29 = vmul.f32 %v268_v25, %v263_v28  ;;  %v276_v30 = vpop.permute.xlu1 %275 }
  0x9e   : > { %v270_v31 = vadd.f32 %v269_v29, %v260_v27 }
  0xa0   : > { %v278_v32 = vmul.f32 %v276_v30, %v270_v31  ;;  %vm271_vm0 = vcmp.gt.f32.partialorder %v270_v31, 0.0 }
  0xa2   : > { %v279_v33 = vsel %vm271_vm0, %v270_v31, %v278_v32 }
  0xa3   : > { %280 = vst [vmem:[%s212_s14] sm:$0xf] %v279_v33 }
  0xa4   : > { %482 = shalt.err (!%p479_p7)
}
  0xa5   : > { %s483_s9 = scalar_lea.hbm %s688_s30, 64  ;;  %s487_s12 = scalar_lea.hbm %s745_s4, 256 }
  0xa6   : > { %p484_p9 = scmp.ne.s32.totalorder %s688_s30, %s483_s9  ;;  %p488_p12 = scmp.lt.u32.totalorder %s688_s30, %s745_s4 }
  0xa7   : > { %p489_p13 = scmp.lt.u32.totalorder %s487_s12, %s483_s9  ;;  %p491_p1 = scmp.lt.u32.totalorder %s483_s9, %s688_s30 }
  0xa8   : > { %p485_p10 = pnand %p484_p9, %p646_p3 }
  0xa9   : > { %p490_p0 = por %p489_p13, %p488_p12 }
  0xaa   : > { %p486_p11 = pneg %p485_p10 }
  0xab   : > { %p492_p2 = por %p491_p1, %p490_p0 }
  0xad   : > { %p493_p4 = pnand %p492_p2, %p486_p11 }
  0xaf   : > { %496 = shalt.err (!%p493_p4)
}
  0xb0   : > { %388 = dma.vmem_to_hbm [thread:$0]  (%p646_p3), %s690_s23, 64, %s688_s30, %s282_s18  }
  0xb1 PF: > { %p394_p5 = scmp.ge.s32.totalorder %s563_s22, 2  ;;  %s309_s24 = sand.u32 1, %s535_s15  }
  0xb2   : > { %s310_s27 = scalar_lea.sflag [#allocation3], %s309_s24 }
  0xb3   : > { %p391_p6 = pnand %p394_p5, %p655_p8 }
  0xb5   : > { %530 = dma.done.wait (!%p391_p6), %s310_s27, 64  }
  0xb6   : > { %532 = vsyncadd (!%p391_p6), %s310_s27, 4294967232  ;;  %s17_s22 = sadd.s32 1, %s563_s22   ;;  %s748_s15 = smov %s539_s16 }
  0xb7   : > { %p14_p7 = scmp.ge.s32.totalorder %s17_s22, 6   ;;  %s749_s16 = smov %s543_s17 }
  0xb8   : > { %s750_s17 = smov %s664_s7  ;;  %s751_s18 = smov %s555_s20 }
  0xb9   : > { %s752_s19 = smov %s559_s21  ;;  %s753_s20 = smov %s756_s25 }
  0xba   : > { %s754_s21 = smov %s760_s26  ;;  %16 = sbr.rel (!%p14_p7) target bundleno = 5 (0x5), region = 71 }
  0xc1   :  { %315 = vsyncpa [#allocation3], 1 }
  0xc2   :  { %317 = vsyncpa [#allocation3 + $0x1], 1 }

</bundles_post_ra>
